<compile_context>
chip_gen: v5e
topology: v5e:2x2
jax: 0.10.0
libtpu: 0.0.40
codegen_flags: <defaults>
</compile_context>

<pallas_src>
from functools import partial

import jax
import jax.numpy as jnp
from jax.experimental import pallas as pl
from jax.experimental.pallas import tpu as pltpu


def _concat_slice_concat_kernel(x_ref, y_ref, o_ref, *, c1, c2, k):
    # refs: x (c1, ts), y (c2, ts), o (c1+c2+k, ts); all channel slices static.
    o_ref[0:c1, :] = x_ref[...]
    o_ref[c1:c1 + c2, :] = y_ref[...]
    base = c1 + c2
    if k <= c1:
        o_ref[base:base + k, :] = x_ref[0:k, :]
    else:
        o_ref[base:base + c1, :] = x_ref[...]
        o_ref[base + c1:base + k, :] = y_ref[0:k - c1, :]


def _sublane_multiple(dtype):
    # f32 -> 8, bf16/f16 -> 16, int8/fp8 -> 32 (narrow dtypes pack along sublanes).
    return max(8, 32 // jnp.dtype(dtype).itemsize)


def _round_up(v, m):
    return ((v + m - 1) // m) * m


def _pick_spatial_tile(S, per_col_bytes, budget):
    """Largest spatial tile (full S, or a multiple of 128) whose double-buffered
    blocks fit `budget`.  The budget is actually enforced; a ragged last tile is
    fine because Pallas masks partial edge blocks."""
    max_ts = max(budget // max(per_col_bytes, 1), 1)
    if S <= max_ts:
        return S                      # whole spatial extent (== full array dim)
    ts = (max_ts // 128) * 128        # lane-aligned, budget-respecting tile
    return max(ts, 128)               # never below one full lane group


def model_forward(x, y):
    assert x.shape[0] == y.shape[0]
    assert x.shape[2:] == y.shape[2:]
    # torch.cat promotes dtypes; mirror that so every slab writes the out dtype.
    out_dtype = jnp.promote_types(x.dtype, y.dtype)
    x = x.astype(out_dtype)
    y = y.astype(out_dtype)

    B, c1, H, W = x.shape
    c2 = y.shape[1]
    # v2 = v1[:, 0:HUGE] == v1; v3 = v1[:, :H], clamped to min(H, C1+C2) channels.
    k = min(H, c1 + c2)
    c_out = c1 + c2 + k

    # Flatten (H, W) -> S so the last dim is lane-dense (free reshape for NCHW).
    S = H * W
    x2 = x.reshape(B, c1, S)
    y2 = y.reshape(B, c2, S)

    itemsize = jnp.dtype(out_dtype).itemsize
    sub = _sublane_multiple(out_dtype)
    # Double-buffered blocks (x + y + out); channel dims rounded up to the
    # sublane multiple so VMEM padding of tiny channel counts is accounted for.
    padded_rows = _round_up(c1, sub) + _round_up(c2, sub) + _round_up(c_out, sub)
    per_col_bytes = 2 * padded_rows * itemsize

    BLOCK_BUDGET = 20 << 20           # double-buffered block budget (all chips)
    ts = _pick_spatial_tile(S, per_col_bytes, BLOCK_BUDGET)
    n_tiles = pl.cdiv(S, ts)

    # v7x megacore: guarantee >= 2 parallel grid steps so both TensorCores
    # stream HBM (harmless on single-TC chips).
    if B * n_tiles < 2 and S >= 256:
        ts = min(ts, _round_up(pl.cdiv(S, 2), 128))
        n_tiles = pl.cdiv(S, ts)

    # TODO(synk): for tiny channel counts with ts == S one could further flatten
    # channels into the lane dim and emit 3-4 fully contiguous slab copies.
    kern = partial(_concat_slice_concat_kernel, c1=c1, c2=c2, k=k)
    out3 = pl.pallas_call(
        kern,
        out_shape=jax.ShapeDtypeStruct((B, c_out, S), out_dtype),
        grid=(B, n_tiles),
        in_specs=[
            pl.BlockSpec((pl.Squeezed(), c1, ts), lambda b, t: (b, 0, t)),
            pl.BlockSpec((pl.Squeezed(), c2, ts), lambda b, t: (b, 0, t)),
        ],
        out_specs=pl.BlockSpec((pl.Squeezed(), c_out, ts), lambda b, t: (b, 0, t)),
        compiler_params=pltpu.CompilerParams(
            dimension_semantics=("parallel", "parallel"),
            vmem_limit_bytes=48 << 20),
    )(x2, y2)
    return out3.reshape(B, c_out, H, W)


def model_forward_ref(x, y):
    dt = jnp.promote_types(x.dtype, y.dtype)
    v1 = jnp.concatenate([x.astype(dt), y.astype(dt)], axis=1)
    v3 = v1[:, : x.shape[2]]
    return jnp.concatenate([v1, v3], axis=1)


if __name__ == "__main__":
    key = jax.random.PRNGKey(0)
    kx, ky = jax.random.split(key)
    # Shapes chosen so x.shape[2] > x.shape[1] (the slice spans both x and y
    # channel groups) and H*W = 128 (lane-dense flattened spatial dim).
    x = jax.random.normal(kx, (2, 3, 8, 16), dtype=jnp.float32)
    y = jax.random.normal(ky, (2, 4, 8, 16), dtype=jnp.float32)

    out = jax.block_until_ready(model_forward(x, y))
    ref = model_forward_ref(x, y)

    assert out.shape == ref.shape, (out.shape, ref.shape)
    assert jnp.array_equal(out, ref), "mismatch vs reference"
    print("KERNEL_OK")
</pallas_src>

<mosaic_0001>
module attributes {stable_mosaic.version = 11 : i64} {
  func.func @_concat_slice_concat_kernel(%arg0: i32, %arg1: i32, %arg2: memref<1x3x128xf32, #tpu.memory_space<vmem>>, %arg3: memref<1x4x128xf32, #tpu.memory_space<vmem>>, %arg4: memref<1x14x128xf32, #tpu.memory_space<vmem>>) attributes {dimension_semantics = [#tpu.dimension_semantics<parallel>, #tpu.dimension_semantics<parallel>], iteration_bounds = array<i64: 2, 1>, scalar_prefetch = 0 : i64, scratch_operands = 0 : i64, tpu.core_type = #tpu.core_type<tc>, window_params = [{transform_indices = @transform_0, window_bounds = array<i64: 1, 3, 128>}, {transform_indices = @transform_1, window_bounds = array<i64: 1, 4, 128>}, {transform_indices = @transform_2, window_bounds = array<i64: 1, 14, 128>}]} {
    %c0 = arith.constant 0 : index
    %c0_0 = arith.constant 0 : index
    %c0_1 = arith.constant 0 : index
    %0 = vector.load %arg2[%c0, %c0_0, %c0_1] : memref<1x3x128xf32, #tpu.memory_space<vmem>>, vector<1x3x128xf32>
    %1 = vector.shape_cast %0 : vector<1x3x128xf32> to vector<3x128xf32>
    %c0_2 = arith.constant 0 : index
    %c0_3 = arith.constant 0 : index
    %c0_4 = arith.constant 0 : index
    %2 = vector.load %arg4[%c0_2, %c0_3, %c0_4] : memref<1x14x128xf32, #tpu.memory_space<vmem>>, vector<1x3x128xf32>
    %3 = vector.shape_cast %2 : vector<1x3x128xf32> to vector<3x128xf32>
    %4 = vector.shape_cast %1 : vector<3x128xf32> to vector<1x3x128xf32>
    tpu.vector_store %arg4[%c0_2, %c0_3, %c0_4], %4 {strides = array<i32>} : memref<1x14x128xf32, #tpu.memory_space<vmem>>, vector<1x3x128xf32>,
    %c0_5 = arith.constant 0 : index
    %c0_6 = arith.constant 0 : index
    %c0_7 = arith.constant 0 : index
    %5 = vector.load %arg3[%c0_5, %c0_6, %c0_7] : memref<1x4x128xf32, #tpu.memory_space<vmem>>, vector<1x4x128xf32>
    %6 = vector.shape_cast %5 : vector<1x4x128xf32> to vector<4x128xf32>
    %c0_8 = arith.constant 0 : index
    %c3 = arith.constant 3 : index
    %c0_9 = arith.constant 0 : index
    %7 = vector.load %arg4[%c0_8, %c3, %c0_9] : memref<1x14x128xf32, #tpu.memory_space<vmem>>, vector<1x4x128xf32>
    %8 = vector.shape_cast %7 : vector<1x4x128xf32> to vector<4x128xf32>
    %9 = vector.shape_cast %6 : vector<4x128xf32> to vector<1x4x128xf32>
    tpu.vector_store %arg4[%c0_8, %c3, %c0_9], %9 {strides = array<i32>} : memref<1x14x128xf32, #tpu.memory_space<vmem>>, vector<1x4x128xf32>,
    %c0_10 = arith.constant 0 : index
    %c0_11 = arith.constant 0 : index
    %c0_12 = arith.constant 0 : index
    %10 = vector.load %arg2[%c0_10, %c0_11, %c0_12] : memref<1x3x128xf32, #tpu.memory_space<vmem>>, vector<1x3x128xf32>
    %11 = vector.shape_cast %10 : vector<1x3x128xf32> to vector<3x128xf32>
    %c0_13 = arith.constant 0 : index
    %c7 = arith.constant 7 : index
    %c0_14 = arith.constant 0 : index
    %12 = vector.load %arg4[%c0_13, %c7, %c0_14] : memref<1x14x128xf32, #tpu.memory_space<vmem>>, vector<1x3x128xf32>
    %13 = vector.shape_cast %12 : vector<1x3x128xf32> to vector<3x128xf32>
    %14 = vector.shape_cast %11 : vector<3x128xf32> to vector<1x3x128xf32>
    tpu.vector_store %arg4[%c0_13, %c7, %c0_14], %14 {strides = array<i32>} : memref<1x14x128xf32, #tpu.memory_space<vmem>>, vector<1x3x128xf32>,
    %c0_15 = arith.constant 0 : index
    %c0_16 = arith.constant 0 : index
    %c0_17 = arith.constant 0 : index
    %15 = vector.load %arg3[%c0_15, %c0_16, %c0_17] : memref<1x4x128xf32, #tpu.memory_space<vmem>>, vector<1x4x128xf32>
    %16 = vector.shape_cast %15 : vector<1x4x128xf32> to vector<4x128xf32>
    %c0_18 = arith.constant 0 : index
    %c10 = arith.constant 10 : index
    %c0_19 = arith.constant 0 : index
    %17 = vector.load %arg4[%c0_18, %c10, %c0_19] : memref<1x14x128xf32, #tpu.memory_space<vmem>>, vector<1x4x128xf32>
    %18 = vector.shape_cast %17 : vector<1x4x128xf32> to vector<4x128xf32>
    %19 = vector.shape_cast %16 : vector<4x128xf32> to vector<1x4x128xf32>
    tpu.vector_store %arg4[%c0_18, %c10, %c0_19], %19 {strides = array<i32>} : memref<1x14x128xf32, #tpu.memory_space<vmem>>, vector<1x4x128xf32>,
    return
  }
  func.func @transform_0(%arg0: i32, %arg1: i32) -> (i32, i32, i32) {
    %c0_i32 = arith.constant 0 : i32
    %c0_i32_0 = arith.constant 0 : i32
    return %arg0, %c0_i32, %arg1 : i32, i32, i32
  }
  func.func @transform_1(%arg0: i32, %arg1: i32) -> (i32, i32, i32) {
    %c0_i32 = arith.constant 0 : i32
    %c0_i32_0 = arith.constant 0 : i32
    return %arg0, %c0_i32, %arg1 : i32, i32, i32
  }
  func.func @transform_2(%arg0: i32, %arg1: i32) -> (i32, i32, i32) {
    %c0_i32 = arith.constant 0 : i32
    %c0_i32_0 = arith.constant 0 : i32
    return %arg0, %c0_i32, %arg1 : i32, i32, i32
  }
}

</mosaic_0001>

<bundles_post_ra>
// kernel: tpu_custom_call.1
= control target key start
LH: loop header
LB: loop body
LE: loop exit
PB: predicated region body
PF: predicated region fallthrough
CT: control target
= control target key end

     0   :  { %s378_s9 = smov 0   ;;  %s380_s10 = smov 0   ;;  %s402_s0 = inlined_call_operand.vmem [shape: f32[2,3,128], index: 0, kind: input, shape index: {}]   ;;  %s403_s1 = inlined_call_operand.vmem [shape: f32[2,4,128], index: 1, kind: input, shape index: {}]   ;;  %s404_s2 = inlined_call_operand.vmem [shape: f32[2,14,128], index: 2, kind: output, shape index: {}]  }
   0x1   :  { %s382_s11 = smov 0  }
   0x2 LB: > { %s24_s12 = sadd.s32 1, %s357_s10  ;;  %p307_p0 = scmp.ge.s32.totalorder %s361_s11, 1  ;;  %s361_s11 = sphi %s382_s11, %s12_s11   ;;  %s357_s10 = sphi %s380_s10, %s406_s10   ;;  %s353_s9 = sphi %s378_s9, %s405_s9  }
   0x3   : > { %p26_p1 = scmp.ge.s32.totalorder %s24_s12, 2  ;;  %p144_p2 = scmp.lt.s32.totalorder %s361_s11, 3 }
   0x5   : > { %s408_s12 = smov (%p26_p1, %s24_s12), 0  ;;  %p145_p3 = pnand %p307_p0, %p144_p2 }
   0x6   : > { %p178_p4 = scmp.lt.s32.totalorder (!%p145_p3), %s353_s9, 1 }
   0x7   : > { %148 = sbr.rel (%p145_p3) target bundleno = 20 (0x14), region = 28 }
   0xc   : > { %s410_s9 = smov (!%p178_p4, %s353_s9), 1 }
   0xd   : > { %s308_s13 = sshll.u32 %s410_s9, 2  ;;  %s314_s14 = sshll.u32 %s410_s9, 4 }
   0xe   : > { %s184_s17 = scalar_lea.vmem %s402_s0, %s308_s13  ;;  %s199_s20 = scalar_lea.vmem %s404_s2, %s314_s14 }
   0xf   : > { %v200_v0 = vld [vmem:[%s184_s17] sm:$0x7]  ;;  %s191_s23 = scalar_lea.vmem %s403_s1, %s308_s13 }
  0x10   : > { %v204_v1 = vld [vmem:[%s184_s17] sm:$0x7]  ;;  %201 = vst [vmem:[%s199_s20] sm:$0x7] %v200_v0 }
  0x11   : > { %v202_v2 = vld [vmem:[%s191_s23] sm:$0xf]  ;;  %205 = vst [vmem:[%s199_s20 + $0x7] sm:$0x7] %v204_v1 }
  0x12   : > { %v206_v3 = vld [vmem:[%s191_s23] sm:$0xf]  ;;  %203 = vst [vmem:[%s199_s20 + $0x3] sm:$0xf] %v202_v2 }
  0x13   : > { %207 = vst [vmem:[%s199_s20 + $0xa] sm:$0xf] %v206_v3 }
  0x14 PF: > { %s12_s11 = sadd.s32 1, %s361_s11   ;;  %s405_s9 = smov %s357_s10 }
  0x15   : > { %p9_p5 = scmp.ge.s32.totalorder %s12_s11, 4   ;;  %s406_s10 = smov %s408_s12 }
  0x17   :  { %11 = sbr.rel (!%p9_p5) target bundleno = 2 (0x2), region = 61 }

</bundles_post_ra>
